<compile_context>
chip_gen: v7x
topology: tpu7x:2x2x1
jax: 0.10.0
libtpu: 0.0.40
codegen_flags: <defaults>
</compile_context>

<pallas_src>
import jax
import jax.numpy as jnp
from jax.experimental import pallas as pl
from jax.experimental.pallas import tpu as pltpu

IN_CHANNELS = 32   # in_channels == feature dim == GRU hidden size
NUM_NODES = 16
NUM_EDGES = 40


def roland_kernel(w0_ref, wcat_ref, bcat_ref, x_ref, a_ref, out_ref):
    C = w0_ref.shape[0]
    w0 = w0_ref[...]                                              # [C, C]

    # --- GRU single step (seq_len = 1): input rows = W0, hidden rows = W0 ---
    # One fused MXU pass for all six gate pre-activations + one bias add.
    # Column layout: [gir | giz | ghr | ghz | gin | ghn]
    g = (jnp.dot(w0, wcat_ref[...], preferred_element_type=jnp.float32)
         + bcat_ref[...])                                         # [C, 6C]

    # Fused (r, z): one 2C-lane-dense sigmoid instead of two 32-wide ones.
    rz = jax.nn.sigmoid(g[:, 0:2 * C] + g[:, 2 * C:4 * C])        # [C, 2C]
    r = rz[:, 0:C]
    z = rz[:, C:2 * C]
    n = jnp.tanh(g[:, 4 * C:5 * C] + r * g[:, 5 * C:6 * C])       # [C, C]
    wg = (1.0 - z) * n + z * w0                                   # evolved weight W  [C, C]

    # --- GCNConv_Fixed_W: out = A_hat @ (X @ W) ---
    xw = jnp.dot(x_ref[...], wg, preferred_element_type=jnp.float32)      # [N, C]
    out_ref[...] = jnp.dot(a_ref[...], xw, preferred_element_type=jnp.float32)  # [N, C]


def gcn_norm_dense(edge_index, num_nodes, improved=False, add_self_loops=True,
                   edge_weight=None):
    """gcn_norm (PyG) as a dense normalized adjacency A_hat[dst, src].

    Built with one-hot matmuls (single fused HLOs) instead of XLA scatter,
    which would serialize the per-edge updates on TPU.
    """
    # TODO(synk): the per-edge self-loop insertion / degree accumulation has no
    # clean Pallas equivalent at this scale; it is done as dense one-hot matmuls
    # in JAX glue and the Pallas kernel consumes the dense normalized adjacency.
    src, dst = edge_index[0], edge_index[1]
    ew = jnp.ones(src.shape[0], jnp.float32) if edge_weight is None else edge_weight
    if add_self_loops:
        fill = 2.0 if improved else 1.0
        loop = jnp.arange(num_nodes, dtype=src.dtype)
        src = jnp.concatenate([src, loop])
        dst = jnp.concatenate([dst, loop])
        ew = jnp.concatenate([ew, jnp.full((num_nodes,), fill, jnp.float32)])

    src_oh = jax.nn.one_hot(src, num_nodes, dtype=jnp.float32)    # [E', N]
    dst_oh = jax.nn.one_hot(dst, num_nodes, dtype=jnp.float32)    # [E', N]

    deg = dst_oh.T @ ew                                           # [N]  (scatter-free)
    dis = jnp.where(deg > 0, jax.lax.rsqrt(deg), 0.0)             # deg^{-1/2}
    norm = (src_oh @ dis) * ew * (dst_oh @ dis)                   # [E'] (gather-free)
    a_hat = dst_oh.T @ (norm[:, None] * src_oh)                   # [N, N]
    return a_hat


def roland_forward(X, edge_index, params, edge_weight=None):
    """X: [N, C] f32; edge_index: [2, E] int32; params: PyTorch-style dict."""
    C = params["initial_weight"].shape[0]
    N = X.shape[0]

    a_hat = gcn_norm_dense(edge_index, N, edge_weight=edge_weight)

    wih, whh = params["weight_ih_l0"], params["weight_hh_l0"]     # [3C, C]
    bih, bhh = params["bias_ih_l0"], params["bias_hh_l0"]         # [3C]

    # Pack all six pre-transposed gate weights into ONE lane-dense RHS and all
    # six biases into ONE [1, 6C] row, in matching column order:
    #   [ir | iz | hr | hz | in | hn]
    w_cat = jnp.concatenate(
        [wih[0:C].T, wih[C:2 * C].T,            # Wir^T, Wiz^T
         whh[0:C].T, whh[C:2 * C].T,            # Whr^T, Whz^T
         wih[2 * C:3 * C].T, whh[2 * C:3 * C].T],  # Win^T, Whn^T
        axis=1)                                                    # [C, 6C]
    b_cat = jnp.concatenate(
        [bih[0:C], bih[C:2 * C],
         bhh[0:C], bhh[C:2 * C],
         bih[2 * C:3 * C], bhh[2 * C:3 * C]])[None, :]             # [1, 6C]

    vmem = pl.BlockSpec(memory_space=pltpu.MemorySpace.VMEM)       # full-array VMEM blocks
    flops = 2 * (C * C * 6 * C + N * C * C + N * N * C)
    bytes_accessed = 4 * (C * C + 6 * C * C + 6 * C + 2 * N * C + N * N)
    cost = pl.CostEstimate(flops=flops,
                           transcendentals=3 * C * C,
                           bytes_accessed=bytes_accessed)

    out = pl.pallas_call(
        roland_kernel,
        out_shape=jax.ShapeDtypeStruct((N, C), jnp.float32),
        in_specs=[vmem] * 5,
        out_specs=vmem,
        cost_estimate=cost,
    )(params["initial_weight"], w_cat, b_cat, X, a_hat)
    return out                                                    # [N, C]


def init_params(key, C):
    """Deterministic synthetic parameters with the nn.Module's shapes."""
    ks = jax.random.split(key, 5)
    bound = 1.0 / jnp.sqrt(C)          # PyTorch GRU default init range
    glorot = jnp.sqrt(6.0 / (C + C))   # glorot(initial_weight)
    return {
        "initial_weight": jax.random.uniform(ks[0], (C, C), jnp.float32, -glorot, glorot),
        "weight_ih_l0": jax.random.uniform(ks[1], (3 * C, C), jnp.float32, -bound, bound),
        "weight_hh_l0": jax.random.uniform(ks[2], (3 * C, C), jnp.float32, -bound, bound),
        "bias_ih_l0": jax.random.uniform(ks[3], (3 * C,), jnp.float32, -bound, bound),
        "bias_hh_l0": jax.random.uniform(ks[4], (3 * C,), jnp.float32, -bound, bound),
    }


def reference_forward(X, edge_index, params, edge_weight=None):
    """Pure-JAX reference mirroring the PyTorch forward (full f32 precision)."""
    hp = jax.lax.Precision.HIGHEST
    C = params["initial_weight"].shape[0]
    w0 = params["initial_weight"]
    gi = jnp.dot(w0, params["weight_ih_l0"].T, precision=hp) + params["bias_ih_l0"]
    gh = jnp.dot(w0, params["weight_hh_l0"].T, precision=hp) + params["bias_hh_l0"]
    r = jax.nn.sigmoid(gi[:, :C] + gh[:, :C])
    z = jax.nn.sigmoid(gi[:, C:2 * C] + gh[:, C:2 * C])
    n = jnp.tanh(gi[:, 2 * C:] + r * gh[:, 2 * C:])
    wg = (1.0 - z) * n + z * w0
    a_hat = gcn_norm_dense(edge_index, X.shape[0], edge_weight=edge_weight)
    return jnp.dot(a_hat, jnp.dot(X, wg, precision=hp), precision=hp)


if __name__ == "__main__":
    key = jax.random.PRNGKey(0)
    k_x, k_e1, k_e2, k_par = jax.random.split(key, 4)

    X = jax.random.normal(k_x, (NUM_NODES, IN_CHANNELS), jnp.float32)
    src = jax.random.randint(k_e1, (NUM_EDGES,), 0, NUM_NODES, dtype=jnp.int32)
    dst = jax.random.randint(k_e2, (NUM_EDGES,), 0, NUM_NODES, dtype=jnp.int32)
    dst = jnp.where(src == dst, (dst + 1) % NUM_NODES, dst)       # keep graph self-loop-free
    edge_index = jnp.stack([src, dst])                            # [2, E]

    params = init_params(k_par, IN_CHANNELS)

    out = roland_forward(X, edge_index, params)
    out = jax.block_until_ready(out)

    ref = reference_forward(X, edge_index, params)
    assert out.shape == (NUM_NODES, IN_CHANNELS)
    max_err = float(jnp.max(jnp.abs(out - ref)))
    assert max_err < 1e-2, f"max abs err {max_err}"

    print("KERNEL_OK")
</pallas_src>

<mosaic_0001>
module attributes {stable_mosaic.version = 11 : i64} {
  func.func @roland_kernel(%arg0: memref<32x32xf32, #tpu.memory_space<vmem>>, %arg1: memref<32x192xf32, #tpu.memory_space<vmem>>, %arg2: memref<1x192xf32, #tpu.memory_space<vmem>>, %arg3: memref<16x32xf32, #tpu.memory_space<vmem>>, %arg4: memref<16x16xf32, #tpu.memory_space<vmem>>, %arg5: memref<16x32xf32, #tpu.memory_space<vmem>>) attributes {dimension_semantics = [], scalar_prefetch = 0 : i64, scratch_operands = 0 : i64, tpu.core_type = #tpu.core_type<tc>} {
    %c0 = arith.constant 0 : index
    %c0_0 = arith.constant 0 : index
    %0 = vector.load %arg0[%c0, %c0_0] : memref<32x32xf32, #tpu.memory_space<vmem>>, vector<32x32xf32>
    %c0_1 = arith.constant 0 : index
    %c0_2 = arith.constant 0 : index
    %1 = vector.load %arg1[%c0_1, %c0_2] : memref<32x192xf32, #tpu.memory_space<vmem>>, vector<32x192xf32>
    %cst = arith.constant dense<0.000000e+00> : vector<32x192xf32>
    %2 = tpu.matmul %0, %1, %cst {dimension_numbers = #tpu.dot_dimension_numbers<[1], [0], [0], [1], [0, 0, 1, 1], [], []>} : vector<32x32xf32>, vector<32x192xf32>, vector<32x192xf32> -> vector<32x192xf32>
    %c0_3 = arith.constant 0 : index
    %c0_4 = arith.constant 0 : index
    %3 = vector.load %arg2[%c0_3, %c0_4] : memref<1x192xf32, #tpu.memory_space<vmem>>, vector<1x192xf32>
    %4 = vector.broadcast %3 : vector<1x192xf32> to vector<32x192xf32>
    %5 = arith.addf %2, %4 : vector<32x192xf32>
    %6 = vector.extract_strided_slice %5 {offsets = [0, 0], sizes = [32, 64], strides = [1, 1]} : vector<32x192xf32> to vector<32x64xf32>
    %7 = vector.extract_strided_slice %5 {offsets = [0, 64], sizes = [32, 64], strides = [1, 1]} : vector<32x192xf32> to vector<32x64xf32>
    %8 = arith.addf %6, %7 : vector<32x64xf32>
    %9 = arith.negf %8 : vector<32x64xf32>
    %10 = math.exp %9 : vector<32x64xf32>
    %cst_5 = arith.constant 1.000000e+00 : f32
    %11 = vector.broadcast %cst_5 : f32 to vector<32x64xf32>
    %12 = arith.addf %11, %10 : vector<32x64xf32>
    %13 = arith.divf %11, %12 : vector<32x64xf32>
    %14 = vector.extract_strided_slice %13 {offsets = [0, 0], sizes = [32, 32], strides = [1, 1]} : vector<32x64xf32> to vector<32x32xf32>
    %15 = vector.extract_strided_slice %13 {offsets = [0, 32], sizes = [32, 32], strides = [1, 1]} : vector<32x64xf32> to vector<32x32xf32>
    %16 = vector.extract_strided_slice %5 {offsets = [0, 128], sizes = [32, 32], strides = [1, 1]} : vector<32x192xf32> to vector<32x32xf32>
    %17 = vector.extract_strided_slice %5 {offsets = [0, 160], sizes = [32, 32], strides = [1, 1]} : vector<32x192xf32> to vector<32x32xf32>
    %18 = arith.mulf %14, %17 : vector<32x32xf32>
    %19 = arith.addf %16, %18 : vector<32x32xf32>
    %20 = math.tanh %19 : vector<32x32xf32>
    %cst_6 = arith.constant 1.000000e+00 : f32
    %21 = vector.broadcast %cst_6 : f32 to vector<32x32xf32>
    %22 = arith.subf %21, %15 : vector<32x32xf32>
    %23 = arith.mulf %22, %20 : vector<32x32xf32>
    %24 = arith.mulf %15, %0 : vector<32x32xf32>
    %25 = arith.addf %23, %24 : vector<32x32xf32>
    %c0_7 = arith.constant 0 : index
    %c0_8 = arith.constant 0 : index
    %26 = vector.load %arg3[%c0_7, %c0_8] : memref<16x32xf32, #tpu.memory_space<vmem>>, vector<16x32xf32>
    %cst_9 = arith.constant dense<0.000000e+00> : vector<16x32xf32>
    %27 = tpu.matmul %26, %25, %cst_9 {dimension_numbers = #tpu.dot_dimension_numbers<[1], [0], [0], [1], [0, 0, 1, 1], [], []>} : vector<16x32xf32>, vector<32x32xf32>, vector<16x32xf32> -> vector<16x32xf32>
    %c0_10 = arith.constant 0 : index
    %c0_11 = arith.constant 0 : index
    %28 = vector.load %arg4[%c0_10, %c0_11] : memref<16x16xf32, #tpu.memory_space<vmem>>, vector<16x16xf32>
    %cst_12 = arith.constant dense<0.000000e+00> : vector<16x32xf32>
    %29 = tpu.matmul %28, %27, %cst_12 {dimension_numbers = #tpu.dot_dimension_numbers<[1], [0], [0], [1], [0, 0, 1, 1], [], []>} : vector<16x16xf32>, vector<16x32xf32>, vector<16x32xf32> -> vector<16x32xf32>
    %c0_13 = arith.constant 0 : index
    %c0_14 = arith.constant 0 : index
    %30 = vector.load %arg5[%c0_13, %c0_14] : memref<16x32xf32, #tpu.memory_space<vmem>>, vector<16x32xf32>
    tpu.vector_store %arg5[%c0_13, %c0_14], %29 {strides = array<i32>} : memref<16x32xf32, #tpu.memory_space<vmem>>, vector<16x32xf32>,
    return
  }
}

</mosaic_0001>

<bundles_post_ra>
// kernel: tpu_custom_call.1
= control target key start
LH: loop header
LB: loop body
LE: loop exit
PB: predicated region body
PF: predicated region fallthrough
CT: control target
= control target key end

     0   :  { %10 = vsyncpa [#allocation3], 0  ;;  %s902_s0 = inlined_call_operand.hbm [shape: f32[32,32], index: 0, kind: input, shape index: {}]   ;;  %s903_s1 = inlined_call_operand.hbm [shape: f32[32,192], index: 1, kind: input, shape index: {}]   ;;  %s904_s2 = inlined_call_operand.vmem [shape: f32[1,192], index: 2, kind: input, shape index: {}]   ;;  %s905_s3 = inlined_call_operand.hbm [shape: f32[16,32], index: 3, kind: input, shape index: {}]   ;;  %s906_s4 = inlined_call_operand.hbm [shape: f32[16,16], index: 4, kind: input, shape index: {}]   ;;  %s907_s5 = inlined_call_operand.hbm [shape: f32[16,32], index: 5, kind: output, shape index: {}]  }
   0x1   :  { %11 = vsyncpa [#allocation6], 0 }
   0x2   :  { %12 = vsyncpa [#allocation9], 0 }
   0x3   :  { %13 = vsyncpa [#allocation4], 0  ;;  %s747_s18 = smov [#allocation5]   ;;  %s629_s22 = scalar_lea.hbm %s903_s1, 1024 }
   0x4   :  { %s31_s19 = sshll.u32 %s747_s18, 4  ;;  %p630_p0 = scmp.ne.s32.totalorder %s903_s1, %s629_s22  ;;  %s32_s19 = int_to_ptr.vmem [resolvable:$true] %s31_s19 }
   0x5   :  { %p633_p1 = scmp.lt.u32.totalorder %s629_s22, %s903_s1 }
   0x7   :  { %p635_p2 = pnand %p633_p1, %p630_p0 }
   0x9   :  { %638 = shalt.err (!%p635_p2)
}
   0xa   :  { %s639_s27 = scalar_lea.vmem %s32_s19, 1024  ;;  %p644_p4 = scmp.lt.s32.totalorder %s32_s19, %s32_s19 }
   0xb   :  { %p640_p3 = scmp.ne.s32.totalorder %s32_s19, %s639_s27  ;;  %p645_p5 = scmp.lt.s32.totalorder %s639_s27, %s639_s27 }
   0xd   :  { %p646_p6 = por %p645_p5, %p644_p4 }
   0xf   :  { %p647_p7 = pnand %p646_p6, %p640_p3 }
  0x11   :  { %650 = shalt.err (!%p647_p7)
}
  0x12   :  { %s748_s28 = smov 256   ;;  %s749_s29 = smov 16  }
  0x13   :  { %37 = dma.hbm_to_vmem [thread:$0]  %s903_s1, 1024, %s32_s19, [#allocation6], %s748_s28, %s748_s28, %s749_s29  }
  0x14   :  { %s750_s7 = smov [#allocation2]   ;;  %s651_s11 = scalar_lea.hbm %s902_s0, 512 }
  0x15   :  { %s19_s8 = sshll.u32 %s750_s7, 4  ;;  %p652_p8 = scmp.ne.s32.totalorder %s902_s0, %s651_s11  ;;  %s20_s8 = int_to_ptr.vmem [resolvable:$true] %s19_s8 }
  0x16   :  { %p655_p9 = scmp.lt.u32.totalorder %s651_s11, %s902_s0 }
  0x18   :  { %p657_p10 = pnand %p655_p9, %p652_p8 }
  0x1a   :  { %660 = shalt.err (!%p657_p10)
}
  0x1b   :  { %s661_s16 = scalar_lea.vmem %s20_s8, 512  ;;  %p666_p12 = scmp.lt.s32.totalorder %s20_s8, %s20_s8 }
  0x1c   :  { %p662_p11 = scmp.ne.s32.totalorder %s20_s8, %s661_s16  ;;  %p667_p13 = scmp.lt.s32.totalorder %s661_s16, %s661_s16 }
  0x1e   :  { %p668_p0 = por %p667_p13, %p666_p12 }
  0x20   :  { %p669_p1 = pnand %p668_p0, %p662_p11 }
  0x22   :  { %672 = shalt.err (!%p669_p1)
}
  0x23   :  { %s751_s1 = smov 128   ;;  %s752_s17 = smov 8  }
  0x24   :  { %25 = dma.hbm_to_vmem [thread:$0]  %s902_s0, 512, %s20_s8, [#allocation3], %s751_s1, %s751_s1, %s752_s17  }
  0x25   :  { %s753_s20 = smov [#allocation7]   ;;  %s754_s22 = smov [#allocation8]  }
  0x26   :  { %s45_s21 = sshll.u32 %s753_s20, 4  ;;  %s57_s23 = sshll.u32 %s754_s22, 4  ;;  %s46_s21 = int_to_ptr.vmem [resolvable:$true] %s45_s21  ;;  %s817_s23 = int_to_ptr.vmem [resolvable:$true] %s57_s23 }
  0x27   :  { %s673_s26 = scalar_lea.hbm %s905_s3, 256 }
  0x28   :  { %p674_p2 = scmp.ne.s32.totalorder %s905_s3, %s673_s26  ;;  %p677_p3 = scmp.lt.u32.totalorder %s673_s26, %s905_s3 }
  0x2a   :  { %p679_p4 = pnand %p677_p3, %p674_p2 }
  0x2c   :  { %682 = shalt.err (!%p679_p4)
}
  0x2d   :  { %s683_s0 = scalar_lea.vmem %s46_s21, 256  ;;  %p688_p6 = scmp.lt.s32.totalorder %s46_s21, %s46_s21 }
  0x2e   :  { %p684_p5 = scmp.ne.s32.totalorder %s46_s21, %s683_s0  ;;  %p689_p7 = scmp.lt.s32.totalorder %s683_s0, %s683_s0 }
  0x30   :  { %p690_p8 = por %p689_p7, %p688_p6 }
  0x32   :  { %p691_p9 = pnand %p690_p8, %p684_p5 }
  0x34   :  { %694 = shalt.err (!%p691_p9)
}
  0x35   :  { %51 = dma.hbm_to_vmem [thread:$0]  %s905_s3, 256, %s46_s21, [#allocation6], %s751_s1, %s751_s1, %s752_s17  }
  0x36   :  { %s695_s10 = scalar_lea.hbm %s906_s4, 256 }
  0x37   :  { %p696_p10 = scmp.ne.s32.totalorder %s906_s4, %s695_s10  ;;  %p699_p11 = scmp.lt.u32.totalorder %s695_s10, %s906_s4 }
  0x39   :  { %p701_p12 = pnand %p699_p11, %p696_p10 }
  0x3b   :  { %704 = shalt.err (!%p701_p12)
}
  0x3c   :  { %s705_s15 = scalar_lea.vmem %s817_s23, 256  ;;  %p710_p0 = scmp.lt.s32.totalorder %s817_s23, %s817_s23 }
  0x3d   :  { %p706_p13 = scmp.ne.s32.totalorder %s817_s23, %s705_s15  ;;  %p711_p1 = scmp.lt.s32.totalorder %s705_s15, %s705_s15 }
  0x3f   :  { %p712_p2 = por %p711_p1, %p710_p0 }
  0x41   :  { %p713_p3 = pnand %p712_p2, %p706_p13 }
  0x43   :  { %716 = shalt.err (!%p713_p3)
}
  0x44   :  { %63 = dma.hbm_to_vmem [thread:$0]  %s906_s4, 256, %s817_s23, [#allocation9], %s751_s1, %s751_s1, %s752_s17  }
  0x45   :  { %739 = dma.done.wait [#allocation3], 512  }
  0x46   :  { %740 = vsyncadd [#allocation3], 4294966784 }
  0x47   :  { %741 = dma.done.wait [#allocation6], 1280  }
  0x48   :  { %742 = vsyncadd [#allocation6], 4294966016 }
  0x49   :  { %743 = dma.done.wait [#allocation9], 256  }
  0x4a   :  { %744 = vsyncadd [#allocation9], 4294967040  ;;  %v755_v0 = vmov 0.0   ;;  %v81_v1 = vld [vmem:[#allocation5 + $0x8] sm:$0xff]  ;;  %v83_v2 = vld [vmem:[#allocation5 + $0x18] sm:$0xff]  ;;  %vm100_vm0 = vcmask 261120   ;;  %v90_v17 = vlaneseq }
  0x4b   :  { %177 = vmatprep.mubr.f32.mxu0 %v755_v0  ;;  %v80_v3 = vld [vmem:[#allocation5] sm:$0xff]  ;;  %v562_v4 = vpack.c.bf16 %v83_v2, %v81_v1  ;;  %v82_v5 = vld [vmem:[#allocation5 + $0x10] sm:$0xff]  ;;  %v85_v6 = vld [vmem:[#allocation5 + $0x28] sm:$0xff]  ;;  %s756_s19 = smov 64   ;;  %s757_s20 = smov 96   ;;  %vm419_vm1 = vcmask 130048  }
  0x4c   :  { %v87_v7 = vld [vmem:[#allocation5 + $0x38] sm:$0xff]  ;;  %v564_v8 = vpack.c.bf16 %v82_v5, %v80_v3  ;;  %v84_v10 = vld [vmem:[#allocation5 + $0x20] sm:$0xff]  ;;  %v86_v11 = vld [vmem:[#allocation5 + $0x30] sm:$0xff]  ;;  %v91_v18 = vshrl.u32 %v90_v17, 7  ;;  %s759_s21 = smov [#allocation10]  }
  0x4d   :  { %v566_v9 = vpack.c.bf16 %v87_v7, %v85_v6  ;;  %563 = vmatprep.subr.bf16.mxu0 %v562_v4  ;;  %v568_v12 = vpack.c.bf16 %v86_v11, %v84_v10  ;;  %v76_v13 = vld [vmem:[#allocation2] sm:$0xff]  ;;  %v77_v14 = vld [vmem:[#allocation2 + $0x8] sm:$0xff]  ;;  %v856_v15 = vld [vmem:[#allocation2 + $0x10] sm:$0xff]  ;;  %s508_s22 = sshll.u32 %s759_s21, 4  ;;  %s509_s22 = int_to_ptr.vmem [resolvable:$true] %s508_s22 }
  0x4e   :  { %565 = vmatpush1.bf16.msra.mxu0 %v564_v8  ;;  %v860_v16 = vld [vmem:[#allocation2 + $0x18] sm:$0xff]  ;;  %v92_v19 = vsub.s32 0, %v91_v18  ;;  %v88_v20 = vld [vmem:[%s904_s2] sm:$0x3]  ;;  %v96_v24 = vsub.s32 1, %v91_v18  ;;  %s758_s2 = smov 32   ;;  %p722_p5 = scmp.lt.s32.totalorder %s509_s22, %s509_s22 }
  0x4f   :  { %567 = vmatprep.subr.bf16.mxu0 %v566_v9  ;;  %s717_s23 = scalar_lea.vmem %s509_s22, 256 }
  0x50   :  { %v93_v21 = vrot.slane %v88_v20, %v92_v19  ;;  %v97_v27 = vrot.slane %v88_v20, %v96_v24  ;;  %p718_p4 = scmp.ne.s32.totalorder %s509_s22, %s717_s23  ;;  %p723_p6 = scmp.lt.s32.totalorder %s717_s23, %s717_s23 }
  0x52   :  { %569 = vmatpush1.bf16.msra.mxu0 %v568_v12  ;;  %p724_p7 = por %p723_p6, %p722_p5 }
  0x54   :  { %p725_p8 = pnand %p724_p7, %p718_p4 }
  0x55   :  { %522 = vmatmul.mubr.msk.f32.vlgmr.msra.gmra.mrb[0].mxu0 %vm100_vm0, %v76_v13 }
  0x56   :  { %183 = vmatprep.mubr.f32.mxu0 %v755_v0 }
  0x59   :  { %523 = vmatmul.mubr.msk.f32.gmra.mrb[2].mxu0 %vm100_vm0, %v77_v14 }
  0x5a   :  { %189 = vmatprep.mubr.f32.mxu0 %v755_v0 }
  0x5d   :  { %524 = vmatmul.mubr.msk.f32.gmra.mrb[4].mxu0 %vm100_vm0, %v856_v15 }
  0x5e   :  { %195 = vmatprep.mubr.f32.mxu0 %v755_v0 }
  0x61   :  { %525 = vmatmul.mubr.msk.f32.gmra.mrb[6].mxu0 %vm100_vm0, %v860_v16 }
 0x128   :  { %v179_v22 = vpop.f32.mrb[0].mxu0 }
 0x129   :  { %v180_v23 = vadd.f32 %v179_v22, %v93_v21  ;;  %v181_v25 = vpop.f32.mrb[1].mxu0 }
 0x12a   :  { %v182_v31 = vadd.f32 %v181_v25, %v97_v27 }
 0x12b   :  { %206 = vrot.lane.b32.xlu0 %v180_v23, %s756_s19 }
 0x12c   :  { %v185_v26 = vpop.f32.mrb[2].mxu0 }
 0x12d   :  { %v186_v28 = vadd.f32 %v185_v26, %v93_v21  ;;  %v187_v29 = vpop.f32.mrb[3].mxu0 }
 0x12e   :  { %v188_v38 = vadd.f32 %v187_v29, %v97_v27 }
 0x12f   :  { %208 = vrot.lane.b32.xlu0 %v186_v28, %s756_s19 }
 0x130   :  { %v191_v30 = vpop.f32.mrb[4].mxu0 }
 0x131   :  { %v192_v32 = vadd.f32 %v191_v30, %v93_v21  ;;  %v193_v33 = vpop.f32.mrb[5].mxu0 }
 0x132   :  { %v194_v35 = vadd.f32 %v193_v33, %v97_v27 }
 0x133   :  { %210 = vrot.lane.b32.xlu1 %v192_v32, %s756_s19  ;;  %250 = vrot.lane.b32.xlu0 %v182_v31, %s757_s20 }
 0x134   :  { %v197_v34 = vpop.f32.mrb[6].mxu0 }
 0x135   :  { %v198_v36 = vadd.f32 %v197_v34, %v93_v21  ;;  %v199_v37 = vpop.f32.mrb[7].mxu0 }
 0x136   :  { %v200_v39 = vadd.f32 %v199_v37, %v97_v27 }
 0x137   :  { %212 = vrot.lane.b32.xlu1 %v198_v36, %s756_s19  ;;  %254 = vrot.lane.b32.xlu0 %v194_v35, %s757_s20 }
 0x13b   :  { %252 = vrot.lane.b32.xlu1 %v188_v38, %s757_s20  ;;  %298 = vrot.lane.b32.xlu0 %v76_v13, %s758_s2 }
 0x13f   :  { %256 = vrot.lane.b32.xlu1 %v200_v39, %s757_s20 }
 0x143   :  { %300 = vrot.lane.b32.xlu1 %v77_v14, %s758_s2 }
 0x19d   :  { %v207_v40 = vpop.permute.xlu0 %206 }
 0x19e   :  { %v218_v41 = vadd.f32 %v207_v40, %v180_v23 }
 0x1a0   :  { %v526_v42 = vmul.f32 -1.442695, %v218_v41 }
 0x1a1   :  { %v209_v43 = vpop.permute.xlu0 %208 }
 0x1a2   :  { %605 = vpow2.f32 %v526_v42  ;;  %v219_v44 = vadd.f32 %v209_v43, %v186_v28 }
 0x1a4   :  { %v527_v45 = vmul.f32 -1.442695, %v219_v44 }
 0x1a5   :  { %v211_v46 = vpop.permute.xlu1 %210  ;;  %v251_v60 = vpop.permute.xlu0 %250 }
 0x1a6   :  { %607 = vpow2.f32 %v527_v45  ;;  %v220_v47 = vadd.f32 %v211_v46, %v192_v32 }
 0x1a8   :  { %v528_v48 = vmul.f32 -1.442695, %v220_v47 }
 0x1a9   :  { %v213_v49 = vpop.permute.xlu1 %212  ;;  %v255_v5 = vpop.permute.xlu0 %254 }
 0x1aa   :  { %609 = vpow2.f32 %v528_v48  ;;  %v221_v50 = vadd.f32 %v213_v49, %v198_v36 }
 0x1ac   :  { %v606_v51 = vpop.eup %605  ;;  %v529_v52 = vmul.f32 -1.442695, %v221_v50 }
 0x1ad   :  { %v234_v53 = vadd.f32 1.0, %v606_v51  ;;  %v253_v1 = vpop.permute.xlu1 %252  ;;  %v299_v18 = vpop.permute.xlu0 %298  ;;  %v319_v51 = vld [vmem:[#allocation7 + $0x8] sm:$0xff] }
 0x1ae   :  { %611 = vpow2.f32 %v529_v52  ;;  %v417_v52 = vld [vmem:[#allocation8] sm:$0xff] }
 0x1af   :  { %613 = vrcp.f32 %v234_v53 }
 0x1b0   :  { %v608_v54 = vpop.eup %607 }
 0x1b1   :  { %v235_v55 = vadd.f32 1.0, %v608_v54  ;;  %v257_v9 = vpop.permute.xlu1 %256 }
 0x1b3   :  { %615 = vrcp.f32 %v235_v55 }
 0x1b4   :  { %v610_v56 = vpop.eup %609 }
 0x1b5   :  { %v236_v57 = vadd.f32 1.0, %v610_v56  ;;  %v301_v19 = vpop.permute.xlu1 %300  ;;  %v418_v56 = vld [vmem:[#allocation8 + $0x8] sm:$0xff] }
 0x1b7   :  { %617 = vrcp.f32 %v236_v57 }
 0x1b8   :  { %v612_v58 = vpop.eup %611 }
 0x1b9   :  { %v614_v59 = vpop.eup %613  ;;  %v237_v61 = vadd.f32 1.0, %v612_v58 }
 0x1ba   :  { %v262_v62 = vmul.f32 %v614_v59, %v251_v60  ;;  %v274_v21 = vsub.f32 1.0, %v614_v59  ;;  %v310_v25 = vmul.f32 %v614_v59, %v299_v18 }
 0x1bb   :  { %619 = vrcp.f32 %v237_v61 }
 0x1bc   :  { %v266_v63 = vadd.f32 %v262_v62, %v182_v31 }
 0x1bd   :  { %v616_v0 = vpop.eup %615 }
 0x1be   :  { %621 = vtanh.f32 %v266_v63  ;;  %v263_v2 = vmul.f32 %v616_v0, %v253_v1  ;;  %v275_v23 = vsub.f32 1.0, %v616_v0  ;;  %v311_v26 = vmul.f32 %v616_v0, %v301_v19 }
 0x1c0   :  { %v267_v3 = vadd.f32 %v263_v2, %v188_v38 }
 0x1c1   :  { %v618_v4 = vpop.eup %617 }
 0x1c2   :  { %v264_v6 = vmul.f32 %v618_v4, %v255_v5  ;;  %623 = vtanh.f32 %v267_v3  ;;  %v276_v33 = vsub.f32 1.0, %v618_v4 }
 0x1c4   :  { %v268_v7 = vadd.f32 %v264_v6, %v194_v35  ;;  %v318_v35 = vld [vmem:[#allocation7] sm:$0xff] }
 0x1c5   :  { %v620_v8 = vpop.eup %619  ;;  %552 = vmatprep.mubr.msk.f32.mxu1 %vm100_vm0, %v318_v35 }
 0x1c6   :  { %625 = vtanh.f32 %v268_v7  ;;  %v265_v10 = vmul.f32 %v620_v8, %v257_v9 }
 0x1c8   :  { %v622_v11 = vpop.eup %621  ;;  %v269_v12 = vadd.f32 %v265_v10, %v200_v39 }
 0x1c9   :  { %282 = vrot.lane.b32.xlu0 %v622_v11, %s758_s2 }
 0x1ca   :  { %627 = vtanh.f32 %v269_v12 }
 0x1cc   :  { %v624_v13 = vpop.eup %623 }
 0x1cd   :  { %284 = vrot.lane.b32.xlu1 %v624_v13, %s758_s2 }
 0x1d0   :  { %v626_v14 = vpop.eup %625 }
 0x1d1   :  { %286 = vrot.lane.b32.xlu0 %v626_v14, %s758_s2 }
 0x1d4   :  { %v628_v17 = vpop.eup %627 }
 0x1d5   :  { %288 = vrot.lane.b32.xlu1 %v628_v17, %s758_s2  ;;  %302 = vrot.lane.b32.xlu0 %v856_v15, %s758_s2 }
 0x1d9   :  { %304 = vrot.lane.b32.xlu1 %v860_v16, %s758_s2  ;;  %v277_v16 = vsub.f32 1.0, %v620_v8 }
 0x23b   :  { %v283_v20 = vpop.permute.xlu0 %282 }
 0x23c   :  { %v294_v22 = vmul.f32 %v283_v20, %v274_v21 }
 0x23e   :  { %v314_v28 = vadd.f32 %v310_v25, %v294_v22 }
 0x23f   :  { %v285_v24 = vpop.permute.xlu1 %284 }
 0x240   :  { %v295_v27 = vmul.f32 %v285_v24, %v275_v23 }
 0x242   :  { %v315_v29 = vadd.f32 %v311_v26, %v295_v27 }
 0x243   :  { %v287_v30 = vpop.permute.xlu0 %286 }
 0x244   :  { %v595_v31 = vpack.i.bf16 %v315_v29, %v314_v28  ;;  %v296_v37 = vmul.f32 %v287_v30, %v276_v33 }
 0x246   :  { %596 = vrot.lane.b32.xlu0 %v595_v31, %s757_s20 }
 0x247   :  { %v289_v15 = vpop.permute.xlu1 %288  ;;  %v303_v32 = vpop.permute.xlu0 %302 }
 0x248   :  { %v312_v34 = vmul.f32 %v618_v4, %v303_v32  ;;  %v297_v38 = vmul.f32 %v289_v15, %v277_v16 }
 0x24a   :  { %v316_v40 = vadd.f32 %v312_v34, %v296_v37 }
 0x24b   :  { %v305_v36 = vpop.permute.xlu1 %304 }
 0x24c   :  { %v313_v39 = vmul.f32 %v620_v8, %v305_v36 }
 0x24e   :  { %v317_v41 = vadd.f32 %v313_v39, %v297_v38 }
 0x250   :  { %v600_v42 = vpack.i.bf16 %v317_v41, %v316_v40 }
 0x252   :  { %601 = vrot.lane.b32.xlu1 %v600_v42, %s757_s20 }
 0x2b8   :  { %v597_v43 = vpop.permute.xlu0 %596 }
 0x2b9   :  { %v599_v44 = vunpack.i.h.bf16 %v597_v43  ;;  %v598_v45 = vunpack.i.l.bf16 %v597_v43 }
 0x2bb   :  { %v570_v46 = vpack.c.bf16 %v599_v44, %v598_v45 }
 0x2bd   :  { %571 = vmatprep.subr.bf16.mxu1 %v570_v46 }
 0x2be   :  { %573 = vmatpush3.bf16.msra.mxu1 %v570_v46 }
 0x2c4   :  { %v602_v47 = vpop.permute.xlu1 %601 }
 0x2c5   :  { %v604_v48 = vunpack.i.h.bf16 %v602_v47  ;;  %v603_v49 = vunpack.i.l.bf16 %v602_v47 }
 0x2c7   :  { %v574_v50 = vpack.c.bf16 %v604_v48, %v603_v49 }
 0x2c9   :  { %575 = vmatprep.subr.bf16.mxu1 %v574_v50 }
 0x2ca   :  { %577 = vmatpush3.bf16.msra.mxu1 %v574_v50 }
 0x2cd   :  { %553 = vmatmul.mubr.msk.f32.vlgmr.msra.gmra.mrb[0].mxu1 %vm100_vm0, %v319_v51 }
 0x2ce   :  { %559 = vmatprep.mubr.msk.f32.mxu1 %vm419_vm1, %v417_v52 }
 0x3a0   :  { %v554_v53 = vpop.f32.mrb[0].mxu1 }
 0x3a1   :  { %v408_v54 = vpop.f32.mrb[1].mxu1 }
 0x3a2   :  { %v578_v55 = vpack.c.bf16 %v554_v53, %v408_v54 }
 0x3a4   :  { %579 = vmatprep.subr.bf16.mxu1 %v578_v55 }
 0x3a5   :  { %581 = vmatpush3.bf16.msra.mxu1 %v578_v55 }
 0x3a8   :  { %560 = vmatmul.mubr.msk.f32.vlgmr.msra.gmra.mrb[2].mxu1 %vm419_vm1, %v418_v56 }
 0x47b   :  { %v561_v57 = vpop.f32.mrb[2].mxu1 }
 0x47c   :  { %502 = vst.msk [vmem:[#allocation10 + $0x8] sm:$0xff] %vm100_vm0, %v561_v57  ;;  %v492_v58 = vpop.f32.mrb[3].mxu1 }
 0x47d   :  { %501 = vst.msk [vmem:[#allocation10] sm:$0xff] %vm100_vm0, %v492_v58 }
 0x47e   :  { %728 = shalt.err (!%p725_p8)
}
 0x47f   :  { %s729_s26 = scalar_lea.hbm %s907_s5, 256 }
 0x480   :  { %p730_p9 = scmp.ne.s32.totalorder %s907_s5, %s729_s26  ;;  %p733_p10 = scmp.lt.u32.totalorder %s729_s26, %s907_s5 }
 0x482   :  { %p735_p11 = pnand %p733_p10, %p730_p9 }
 0x484   :  { %738 = shalt.err (!%p735_p11)
}
 0x485   :  { %514 = dma.vmem_to_hbm [thread:$0]  %s509_s22, 256, %s907_s5, [#allocation4], %s751_s1, %s751_s1, %s752_s17  }
 0x486   :  { %745 = dma.done.wait [#allocation4], 256  }
 0x487   :  { %746 = vsyncadd [#allocation4], 4294967040 }
 0x488   :  { %518 = vsyncpa [#allocation3], 1 }
 0x489   :  { %519 = vsyncpa [#allocation6], 1 }
 0x48a   :  { %520 = vsyncpa [#allocation9], 1 }
 0x48b   :  { %521 = vsyncpa [#allocation4], 1 }

</bundles_post_ra>
